<compile_context>
chip_gen: v7x
topology: tpu7x:2x2x1
jax: 0.10.0
libtpu: 0.0.40
codegen_flags: <defaults>
</compile_context>

<pallas_src>
import functools

import jax
import jax.numpy as jnp
from jax.experimental import pallas as pl
from jax.experimental.pallas import tpu as pltpu


def _ce_label_smooth_kernel(logits_ref, targets_ref, partial_ref, *, epsilon: float, batch: int):
    # logits_ref: (TB, K) float    targets_ref: (TB, 1) int32    partial_ref: (1, 1) f32 SMEM
    i = pl.program_id(0)
    x = logits_ref[...].astype(jnp.float32)
    tb, k = x.shape

    # Numerically stable log-softmax pieces (no full (TB, K) log_probs materialized later).
    m = jnp.max(x, axis=1, keepdims=True)
    shifted = x - m                                                        # (TB, K)
    lse = jnp.log(jnp.sum(jnp.exp(shifted), axis=1, keepdims=True))        # (TB, 1)
    row_sum_shifted = jnp.sum(shifted, axis=1, keepdims=True)              # (TB, 1)

    # shifted value at the target class per row (select + row reduce; no one_hot/smooth temps).
    cls_ids = jax.lax.broadcasted_iota(jnp.int32, (tb, k), 1)
    tgt_shifted = jnp.sum(
        jnp.where(cls_ids == targets_ref[...], shifted, 0.0), axis=1, keepdims=True
    )                                                                      # (TB, 1)

    # per-row loss = lse - (1-eps)*shifted[target] - (eps/K)*sum_k(shifted)
    per_row = lse - (1.0 - epsilon) * tgt_shifted - (epsilon / k) * row_sum_shifted

    # Mask padded rows of a ragged last tile.
    row_ids = i * tb + jax.lax.broadcasted_iota(jnp.int32, (tb, 1), 0)
    per_row = jnp.where(row_ids < batch, per_row, 0.0)

    partial_ref[0, 0] = jnp.sum(per_row)


def _pick_block_b(batch: int, num_classes: int, itemsize: int) -> int:
    # Target ~2 MiB of logits per pipeline buffer (~4 MiB double-buffered) plus compute
    # temporaries — comfortably inside v7x's 32 MiB scoped VMEM while still large enough to
    # amortize per-grid-step overhead on v5e/v6e.
    target_bytes = 2 * 1024 * 1024
    tb = target_bytes // max(1, num_classes * itemsize)
    tb = max(8, (tb // 8) * 8)
    return tb


def cross_entropy_label_smooth(inputs, targets, num_classes, epsilon=0.3, block_b=None):
    """inputs: (B, num_classes) logits (f32 or bf16); targets: (B,) int labels. Scalar f32 loss."""
    B, K = inputs.shape
    assert K == num_classes, (K, num_classes)

    if block_b is None:
        tb = _pick_block_b(B, K, jnp.dtype(inputs.dtype).itemsize)
    else:
        tb = int(block_b)
    if tb >= B:
        tb = B                        # single full tile (exempt from the 8-multiple rule)
    else:
        tb = max(8, (tb // 8) * 8)    # sub-batch tiles keep an 8-multiple sublane extent
    num_tiles = -(-B // tb)

    targets_2d = targets.astype(jnp.int32).reshape(B, 1)

    partials = pl.pallas_call(
        functools.partial(_ce_label_smooth_kernel, epsilon=float(epsilon), batch=int(B)),
        out_shape=jax.ShapeDtypeStruct((num_tiles, 1), jnp.float32),
        grid=(num_tiles,),
        in_specs=[
            pl.BlockSpec((tb, K), lambda i: (i, 0)),   # logits tile (VMEM, double-buffered)
            pl.BlockSpec((tb, 1), lambda i: (i, 0)),   # target ids for this tile
        ],
        out_specs=pl.BlockSpec((1, 1), lambda i: (i, 0), memory_space=pltpu.SMEM),
        compiler_params=pltpu.CompilerParams(
            dimension_semantics=("parallel",),
            vmem_limit_bytes=32 * 1024 * 1024,
        ),
    )(inputs, targets_2d)

    # mean over batch, sum over classes  ==  (sum of per-row losses) / B
    return jnp.sum(partials) / B


def _reference(inputs, targets, num_classes, epsilon=0.3):
    log_probs = jax.nn.log_softmax(inputs.astype(jnp.float32), axis=1)
    one_hot = jax.nn.one_hot(targets, num_classes, dtype=jnp.float32)
    smooth = (1.0 - epsilon) * one_hot + epsilon / num_classes
    return (-smooth * log_probs).mean(0).sum()


if __name__ == "__main__":
    key = jax.random.PRNGKey(0)
    k1, k2, k3, k4 = jax.random.split(key, 4)

    # Case 1: small f32, single tile.
    B1, K1 = 8, 16
    logits1 = jax.random.normal(k1, (B1, K1), dtype=jnp.float32)
    targets1 = jax.random.randint(k2, (B1,), 0, K1, dtype=jnp.int32)
    loss1 = jax.block_until_ready(cross_entropy_label_smooth(logits1, targets1, K1, epsilon=0.3))
    ref1 = _reference(logits1, targets1, K1, epsilon=0.3)
    assert jnp.allclose(loss1, ref1, atol=1e-5, rtol=1e-5), (loss1, ref1)

    # Case 2: bf16 logits, multiple batch tiles with a ragged last tile (exercises masking).
    B2, K2 = 20, 40
    logits2 = jax.random.normal(k3, (B2, K2), dtype=jnp.float32).astype(jnp.bfloat16)
    targets2 = jax.random.randint(k4, (B2,), 0, K2, dtype=jnp.int32)
    loss2 = jax.block_until_ready(
        cross_entropy_label_smooth(logits2, targets2, K2, epsilon=0.3, block_b=8)
    )
    ref2 = _reference(logits2, targets2, K2, epsilon=0.3)
    assert jnp.allclose(loss2, ref2, atol=1e-4, rtol=1e-4), (loss2, ref2)

    print("KERNEL_OK")
</pallas_src>

<mosaic_0001>
module attributes {stable_mosaic.version = 11 : i64} {
  func.func @_ce_label_smooth_kernel(%arg0: i32, %arg1: memref<8x16xf32, #tpu.memory_space<vmem>>, %arg2: memref<8x1xi32, #tpu.memory_space<vmem>>, %arg3: memref<1x1xf32, #tpu.memory_space<smem>>) attributes {dimension_semantics = [#tpu.dimension_semantics<parallel>], iteration_bounds = array<i64: 1>, scalar_prefetch = 0 : i64, scratch_operands = 0 : i64, tpu.core_type = #tpu.core_type<tc>, window_params = [{transform_indices = @transform_0, window_bounds = array<i64: 8, 16>}, {transform_indices = @transform_1, window_bounds = array<i64: 8, 1>}, {transform_indices = @transform_2, window_bounds = array<i64: 1, 1>}]} {
    %c0 = arith.constant 0 : index
    %c0_0 = arith.constant 0 : index
    %0 = vector.load %arg1[%c0, %c0_0] : memref<8x16xf32, #tpu.memory_space<vmem>>, vector<8x16xf32>
    %cst = arith.constant dense<0xFF800000> : vector<8xf32>
    %1 = vector.multi_reduction <maximumf>, %0, %cst [1] : vector<8x16xf32> to vector<8xf32>
    %2 = vector.shape_cast %1 : vector<8xf32> to vector<8x1xf32>
    %3 = vector.broadcast %2 : vector<8x1xf32> to vector<8x16xf32>
    %4 = arith.subf %0, %3 : vector<8x16xf32>
    %5 = math.exp %4 : vector<8x16xf32>
    %cst_1 = arith.constant dense<0.000000e+00> : vector<8xf32>
    %6 = vector.multi_reduction <add>, %5, %cst_1 [1] : vector<8x16xf32> to vector<8xf32>
    %7 = vector.shape_cast %6 : vector<8xf32> to vector<8x1xf32>
    %8 = math.log %7 : vector<8x1xf32>
    %cst_2 = arith.constant dense<0.000000e+00> : vector<8xf32>
    %9 = vector.multi_reduction <add>, %4, %cst_2 [1] : vector<8x16xf32> to vector<8xf32>
    %10 = vector.shape_cast %9 : vector<8xf32> to vector<8x1xf32>
    %11 = tpu.iota {dimensions = array<i32: 1>} : vector<8x16xi32>
    %c0_3 = arith.constant 0 : index
    %c0_4 = arith.constant 0 : index
    %12 = vector.load %arg2[%c0_3, %c0_4] : memref<8x1xi32, #tpu.memory_space<vmem>>, vector<8x1xi32>
    %13 = vector.broadcast %12 : vector<8x1xi32> to vector<8x16xi32>
    %14 = arith.cmpi eq, %11, %13 : vector<8x16xi32>
    %cst_5 = arith.constant 0.000000e+00 : f32
    %15 = vector.broadcast %cst_5 : f32 to vector<8x16xf32>
    %16 = arith.select %14, %4, %15 : vector<8x16xi1>, vector<8x16xf32>
    %cst_6 = arith.constant dense<0.000000e+00> : vector<8xf32>
    %17 = vector.multi_reduction <add>, %16, %cst_6 [1] : vector<8x16xf32> to vector<8xf32>
    %18 = vector.shape_cast %17 : vector<8xf32> to vector<8x1xf32>
    %cst_7 = arith.constant 0.699999988 : f32
    %19 = vector.broadcast %cst_7 : f32 to vector<8x1xf32>
    %20 = arith.mulf %19, %18 : vector<8x1xf32>
    %21 = arith.subf %8, %20 : vector<8x1xf32>
    %cst_8 = arith.constant 1.875000e-02 : f32
    %22 = vector.broadcast %cst_8 : f32 to vector<8x1xf32>
    %23 = arith.mulf %22, %10 : vector<8x1xf32>
    %24 = arith.subf %21, %23 : vector<8x1xf32>
    %c8_i32 = arith.constant 8 : i32
    %25 = arith.muli %arg0, %c8_i32 : i32
    %26 = tpu.iota {dimensions = array<i32: 0>} : vector<8x1xi32>
    %27 = vector.broadcast %25 : i32 to vector<8x1xi32>
    %28 = arith.addi %27, %26 : vector<8x1xi32>
    %c8_i32_9 = arith.constant 8 : i32
    %29 = vector.broadcast %c8_i32_9 : i32 to vector<8x1xi32>
    %30 = arith.cmpi slt, %28, %29 : vector<8x1xi32>
    %cst_10 = arith.constant 0.000000e+00 : f32
    %31 = vector.broadcast %cst_10 : f32 to vector<8x1xf32>
    %32 = arith.select %30, %24, %31 : vector<8x1xi1>, vector<8x1xf32>
    %33 = vector.shape_cast %32 : vector<8x1xf32> to vector<1x8x1xf32>
    %cst_11 = arith.constant dense<0.000000e+00> : vector<1xf32>
    %34 = vector.multi_reduction <add>, %33, %cst_11 [1, 2] : vector<1x8x1xf32> to vector<1xf32>
    %35 = vector.shape_cast %34 : vector<1xf32> to vector<1x1x1xf32>
    %36 = vector.extract %35[0, 0, 0] : f32 from vector<1x1x1xf32>
    %c0_12 = arith.constant 0 : index
    %c0_13 = arith.constant 0 : index
    %37 = memref.load %arg3[%c0_12, %c0_13] : memref<1x1xf32, #tpu.memory_space<smem>>
    memref.store %36, %arg3[%c0_12, %c0_13] : memref<1x1xf32, #tpu.memory_space<smem>>
    return
  }
  func.func @transform_0(%arg0: i32) -> (i32, i32) {
    %c0_i32 = arith.constant 0 : i32
    %c0_i32_0 = arith.constant 0 : i32
    return %arg0, %c0_i32 : i32, i32
  }
  func.func @transform_1(%arg0: i32) -> (i32, i32) {
    %c0_i32 = arith.constant 0 : i32
    %c0_i32_0 = arith.constant 0 : i32
    return %arg0, %c0_i32 : i32, i32
  }
  func.func @transform_2(%arg0: i32) -> (i32, i32) {
    %c0_i32 = arith.constant 0 : i32
    %c0_i32_0 = arith.constant 0 : i32
    return %arg0, %c0_i32 : i32, i32
  }
}

</mosaic_0001>

<bundles_post_ra>
// kernel: tpu_custom_call.1
= control target key start
LH: loop header
LB: loop body
LE: loop exit
PB: predicated region body
PF: predicated region fallthrough
CT: control target
= control target key end

     0   :  { %vm13_vm0 = vcmask 130048   ;;  %s136_s0 = inlined_call_operand.vmem [shape: f32[8,16], index: 0, kind: input, shape index: {}]   ;;  %s137_s1 = inlined_call_operand.vmem [shape: s32[8,1], index: 1, kind: input, shape index: {}]   ;;  %s138_s2 = inlined_call_operand.hbm [shape: f32[1,1], index: 2, kind: output, shape index: {}]  }
   0x1   :  { %v12_v0 = vld [vmem:[%s136_s0] sm:$0xff] }
   0x2   :  { %7 = vsyncpa [#allocation3], 0  ;;  %v14_v1 = vsel %vm13_vm0, %v12_v0, -inf  ;;  %v97_v2 = vmov 0   ;;  %v30_v3 = vld [vmem:[%s137_s1] sm:$0xff]  ;;  %v28_v7 = vlaneseq  ;;  %vm50_vm2 = vcmask 7168  }
   0x3   :  { %80 = vset.pattern.permute.xlu0 %v97_v2  ;;  %s85_s14 = scalar_lea.hbm %s138_s2, 16 }
   0x4   :  { %15 = vmax.xlane.f32.xlu0 %v14_v1  ;;  %v29_v8 = vand.u32 127, %v28_v7  ;;  %p86_p0 = scmp.ne.s32.totalorder %s138_s2, %s85_s14  ;;  %p89_p1 = scmp.lt.u32.totalorder %s85_s14, %s138_s2 }
   0x6   :  { %p91_p2 = pnand %p89_p1, %p86_p0 }
  0x1a   :  { %32 = vperm.xlu0 %80, %v30_v3  }
  0x91   :  { %v16_v4 = vpop.xlane.xlu0 %15 }
  0x92   :  { %v17_v5 = vsub.f32 %v12_v0, %v16_v4 }
  0x94   :  { %v18_v6 = vmul.f32 1.442695, %v17_v5  ;;  %v25_v14 = vsel %vm13_vm0, %v17_v5, 0.0 }
  0x96   :  { %81 = vpow2.f32 %v18_v6 }
  0x99   :  { %v33_v9 = vpop.permute.xlu0 %32 }
  0x9a   :  { %vm34_vm1 = vcmp.eq.s32.totalorder %v29_v8, %v33_v9 }
  0x9b   :  { %v35_v12 = vsel %vm34_vm1, %v17_v5, 0.0 }
  0x9c   :  { %v36_v13 = vsel %vm13_vm0, %v35_v12, 0.0 }
  0xa0   :  { %v82_v10 = vpop.eup %81 }
  0xa1   :  { %v20_v11 = vsel %vm13_vm0, %v82_v10, 0.0 }
  0xa2   :  { %21 = vadd.xlane.f32.xlu1 %v20_v11 }
  0xa6   :  { %37 = vadd.xlane.f32.xlu1 %v36_v13 }
  0xaa   :  { %26 = vadd.xlane.f32.xlu1 %v25_v14 }
 0x12f   :  { %v22_v15 = vpop.xlane.xlu1 %21 }
 0x130   :  { %83 = vlog2.f32 %v22_v15 }
 0x133   :  { %v38_v16 = vpop.xlane.xlu1 %37 }
 0x134   :  { %v39_v20 = vmul.f32 0.7, %v38_v16 }
 0x137   :  { %v27_v18 = vpop.xlane.xlu1 %26 }
 0x138   :  { %v41_v22 = vmul.f32 0.01875, %v27_v18 }
 0x13a   :  { %v84_v17 = vpop.eup %83 }
 0x13b   :  { %v24_v19 = vmul.f32 0.6931472, %v84_v17 }
 0x13d   :  { %v40_v21 = vsub.f32 %v24_v19, %v39_v20 }
 0x13f   :  { %v42_v23 = vsub.f32 %v40_v21, %v41_v22 }
 0x141   :  { %v51_v24 = vsel %vm50_vm2, %v42_v23, 0.0 }
 0x142   :  { %52 = vadd.xlane.f32.xlu1 %v51_v24 }
 0x1cf   :  { %v53_v25 = vpop.xlane.xlu1 %52 }
 0x1d0   :  { %v54_v26 = vrot.slane %v53_v25, 4 }
 0x1d2   :  { %v55_v27 = vadd.f32 %v54_v26, %v53_v25 }
 0x1d4   :  { %v56_v28 = vrot.slane %v55_v27, 2 }
 0x1d6   :  { %v57_v29 = vadd.f32 %v56_v28, %v55_v27 }
 0x1d8   :  { %v58_v30 = vrot.slane %v57_v29, 1 }
 0x1da   :  { %v59_v31 = vadd.f32 %v58_v30, %v57_v29 }
 0x1dc   :  { %76 = vpush %v59_v31 }
 0x20d   :  { %s77_s0 = spop %76 }
 0x20e   :  { %62 = sst [smem:[#allocation2]] %s77_s0 }
 0x20f   :  { %94 = shalt.err (!%p91_p2)
}
 0x210   :  { %s98_s19 = smov [#allocation2]  }
 0x211   :  { %70 = dma.smem_to_hbm %s98_s19, 16, %s138_s2, [#allocation3]  }
 0x212   :  { %95 = dma.done.wait [#allocation3], 16  }
 0x213   :  { %96 = vsyncadd [#allocation3], 4294967280 }
 0x214   :  { %74 = sfence }
 0x215   :  { %75 = vsyncpa [#allocation3], 1 }

</bundles_post_ra>
